<compile_context>
chip_gen: v5e
topology: v5e:2x2
jax: 0.10.0
libtpu: 0.0.40
codegen_flags: <defaults>
</compile_context>

<pallas_src>
import functools

import jax
import jax.numpy as jnp
from jax import lax
from jax.experimental import pallas as pl
from jax.experimental.pallas import tpu as pltpu

LN_EPS = 1e-5  # torch.nn.functional.layer_norm default


def _round_up(x, m):
    return (x + m - 1) // m * m


def _tpu_config():
    """Generation-specific tile / VMEM-cap defaults (v5e / v6e / v7x)."""
    kind = ""
    try:
        kind = jax.devices()[0].device_kind.lower()
    except Exception:
        pass
    phys_vmem = None
    try:
        phys_vmem = int(pltpu.get_tpu_info().vmem_capacity_bytes)
    except Exception:
        phys_vmem = None

    small_vmem = (phys_vmem is not None) and (phys_vmem <= (64 << 20))
    if ("v7" in kind) or ("7x" in kind) or small_vmem:
        # v7x: 64 MiB VMEM/TC, ~3.2 TB/s HBM.  Keep tm=512 (arith intensity ≈ tm flops
        # per weight byte, crossover ~310); recover VMEM via residency trims, not tm.
        return dict(tm=512, tk=512, vmem_cap=56 << 20)
    if "v6" in kind:
        # v6e: 128 MiB VMEM, crossover ~650-700 flops/byte -> tm=1024 to stay MXU-bound.
        return dict(tm=1024, tk=512, vmem_cap=104 << 20)
    if ("v5e" in kind) or ("v5 lite" in kind) or ("v5lite" in kind):
        # v5e: crossover only ~240 flops/byte -> tm=256 is already compute-bound.
        return dict(tm=256, tk=512, vmem_cap=96 << 20)
    # Unknown / v4 / v5p: conservative.
    return dict(tm=512, tk=512, vmem_cap=64 << 20)


def _ffn_kernel(x_ref, gamma_ref, beta_ref, w1_ref, w2_ref, o_ref, *scratch,
                d_model, mask_features, acc_into_out):
    """One (row tile i, d_ff chunk k) grid step."""
    if acc_into_out:
        (xn_ref,) = scratch
        acc_ref = o_ref          # f32 output block is resident across the k axis
    else:
        xn_ref, acc_ref = scratch
    k = pl.program_id(1)

    # ---- k == 0: LayerNorm the row tile once (f32), cache it, zero the accumulator ----
    @pl.when(k == 0)
    def _():
        x = x_ref[...].astype(jnp.float32)
        inv_d = 1.0 / d_model
        if mask_features:
            # Feature dim was zero-padded to a multiple of 128: mask padded lanes so
            # mean/var are taken over the true d_model only.
            col = lax.broadcasted_iota(jnp.int32, x.shape, 1)
            valid = col < d_model
            x = jnp.where(valid, x, 0.0)
            mean = jnp.sum(x, axis=-1, keepdims=True) * inv_d
            centered = jnp.where(valid, x - mean, 0.0)
        else:
            mean = jnp.sum(x, axis=-1, keepdims=True) * inv_d
            centered = x - mean
        var = jnp.sum(centered * centered, axis=-1, keepdims=True) * inv_d
        xn = centered * lax.rsqrt(var + LN_EPS)
        xn = xn * gamma_ref[...].astype(jnp.float32) + beta_ref[...].astype(jnp.float32)
        xn_ref[...] = xn.astype(xn_ref.dtype)          # cache LN output (matmul dtype)
        acc_ref[...] = jnp.zeros_like(acc_ref)

    # ---- every k: acc += relu(xn @ W1[:, k-chunk]) @ W2[k-chunk, :]  (f32 acc) ----
    h = jnp.dot(xn_ref[...], w1_ref[...], preferred_element_type=jnp.float32)
    h = jnp.maximum(h, 0.0)
    acc_ref[...] += jnp.dot(h.astype(w2_ref.dtype), w2_ref[...],
                            preferred_element_type=jnp.float32)

    # ---- last k: write the finished row tile (only when acc is a separate scratch) ----
    if not acc_into_out:
        @pl.when(k == pl.num_programs(1) - 1)
        def _():
            o_ref[...] = acc_ref[...].astype(o_ref.dtype)


def poswise_ffn(x, gamma, beta, w1, w2, *, tm=None, tk=None,
                matmul_dtype=jnp.bfloat16):
    """x: [B, S, d_model]; w1: [d_model, d_ff]; w2: [d_ff, d_input] -> [B, S, d_input]."""
    B, S, d_model = x.shape
    d_ff = w1.shape[1]
    d_input = w2.shape[1]
    M = B * S

    cfg = _tpu_config()
    if tm is None:
        tm = cfg["tm"]
    if tk is None:
        tk = cfg["tk"]
    vmem_cap = cfg["vmem_cap"]

    # --- tile sizes / padded dims (feature dims lane-dense: multiples of 128) ---
    d_model_p = _round_up(d_model, 128)
    d_input_p = _round_up(d_input, 128)
    tk = max(128, _round_up(min(tk, _round_up(d_ff, 128)), 128))
    d_ff_p = _round_up(d_ff, tk)
    tm = max(16, _round_up(min(tm, _round_up(M, 16)), 16))
    M_p = _round_up(M, tm)
    n_row_tiles = M_p // tm

    # Accumulate straight into the (k-resident) output block when it is f32: saves the
    # tm*d_input_p*4 accumulator scratch with no extra HBM traffic (review, v7x).
    out_dtype = x.dtype
    acc_into_out = jnp.dtype(out_dtype) == jnp.dtype(jnp.float32)

    # Stream x in the narrower of (x.dtype, matmul_dtype): halves x's DMA bytes and its
    # double-buffer residency; LN arithmetic stays f32 inside the kernel (review, v7x).
    x_stream_dtype = (matmul_dtype
                      if jnp.dtype(matmul_dtype).itemsize < jnp.dtype(x.dtype).itemsize
                      else x.dtype)

    def _prep2d(a, rows, cols, dtype):
        # Skip pad / cast entirely when already aligned (review: keep off the hot path;
        # for repeated calls, do this once at init and pass the prepared arrays).
        if a.shape != (rows, cols):
            a = jnp.pad(a, ((0, rows - a.shape[0]), (0, cols - a.shape[1])))
        if a.dtype != jnp.dtype(dtype):
            a = a.astype(dtype)
        return a

    x2d = _prep2d(x.reshape(M, d_model), M_p, d_model_p, x_stream_dtype)
    gamma2d = _prep2d(gamma.reshape(1, d_model), 1, d_model_p, gamma.dtype)
    beta2d = _prep2d(beta.reshape(1, d_model), 1, d_model_p, beta.dtype)
    w1p = _prep2d(w1, d_model_p, d_ff_p, matmul_dtype)
    w2p = _prep2d(w2, d_ff_p, d_input_p, matmul_dtype)

    grid = (n_row_tiles, d_ff_p // tk)

    itm = lambda dt: jnp.dtype(dt).itemsize
    xb, wb, ob = itm(x_stream_dtype), itm(matmul_dtype), itm(out_dtype)

    # --- VMEM budget: double-buffered streamed blocks + scratch + the (tm, tk)
    #     compiler-managed `h` temp (f32 result + its cast copy), capped per generation ---
    vmem_est = (2 * tm * d_model_p * xb                        # x tiles
                + 2 * (d_model_p * tk + tk * d_input_p) * wb   # W1/W2 chunks
                + 2 * tm * d_input_p * ob                      # out tiles
                + 2 * 2 * d_model_p * itm(gamma.dtype)         # gamma/beta
                + tm * d_model_p * wb                          # LN cache scratch
                + (0 if acc_into_out else tm * d_input_p * 4)  # f32 accumulator
                + tm * tk * 4 + tm * tk * wb)                  # h temp + bf16 cast copy
    vmem_limit = int(min(max(int(vmem_est * 1.2) + (4 << 20), 32 << 20), vmem_cap))

    # Weight chunks are re-streamed once per row tile -> count them n_row_tiles times.
    cost = pl.CostEstimate(
        flops=int(2 * M * d_model * d_ff + 2 * M * d_ff * d_input),
        transcendentals=int(M),  # one rsqrt per row
        bytes_accessed=int(M_p * d_model_p * xb
                           + n_row_tiles * (d_model_p * d_ff_p + d_ff_p * d_input_p) * wb
                           + M_p * d_input_p * ob
                           + 2 * d_model_p * itm(gamma.dtype)),
    )

    kernel = functools.partial(_ffn_kernel, d_model=d_model,
                               mask_features=(d_model_p != d_model),
                               acc_into_out=acc_into_out)

    scratch_shapes = [pltpu.VMEM((tm, d_model_p), matmul_dtype)]   # cached LN output
    if not acc_into_out:
        scratch_shapes.append(pltpu.VMEM((tm, d_input_p), jnp.float32))  # f32 accumulator

    # x / out / gamma / beta block indices are constant over k, so they are only
    # re-DMA'd when the row tile changes; W1/W2 stream along k.
    out2d = pl.pallas_call(
        kernel,
        out_shape=jax.ShapeDtypeStruct((M_p, d_input_p), out_dtype),
        grid_spec=pltpu.PrefetchScalarGridSpec(
            num_scalar_prefetch=0,
            grid=grid,
            in_specs=[
                pl.BlockSpec((tm, d_model_p), lambda i, k: (i, 0)),   # x row tile
                pl.BlockSpec((1, d_model_p), lambda i, k: (0, 0)),    # gamma
                pl.BlockSpec((1, d_model_p), lambda i, k: (0, 0)),    # beta
                pl.BlockSpec((d_model_p, tk), lambda i, k: (0, k)),   # W1 chunk
                pl.BlockSpec((tk, d_input_p), lambda i, k: (k, 0)),   # W2 chunk
            ],
            out_specs=pl.BlockSpec((tm, d_input_p), lambda i, k: (i, 0)),
            scratch_shapes=scratch_shapes,
        ),
        compiler_params=pltpu.CompilerParams(
            dimension_semantics=("parallel", "arbitrary"),
            vmem_limit_bytes=vmem_limit,
        ),
        cost_estimate=cost,
    )(x2d, gamma2d, beta2d, w1p, w2p)

    if (M_p != M) or (d_input_p != d_input):
        out2d = out2d[:M, :d_input]
    return out2d.reshape(B, S, d_input)


def init_params(key, d_model, d_input, d_ff, dtype=jnp.float32):
    """Deterministic synthetic parameters matching the PyTorch module's shapes/init."""
    k1, k2 = jax.random.split(key)
    gamma = jnp.ones((d_model,), dtype=dtype)   # LayerNorm.gamma init = ones
    beta = jnp.zeros((d_model,), dtype=dtype)   # LayerNorm.beta buffer = zeros
    bound1 = 1.0 / (d_model ** 0.5)
    w1 = jax.random.uniform(k1, (d_model, d_ff), dtype=dtype, minval=-bound1, maxval=bound1)
    bound2 = 1.0 / (d_ff ** 0.5)
    w2 = jax.random.uniform(k2, (d_ff, d_input), dtype=dtype, minval=-bound2, maxval=bound2)
    return gamma, beta, w1, w2


def _reference(x, gamma, beta, w1, w2):
    xf = x.astype(jnp.float32)
    mean = jnp.mean(xf, axis=-1, keepdims=True)
    var = jnp.mean((xf - mean) ** 2, axis=-1, keepdims=True)
    xn = (xf - mean) / jnp.sqrt(var + LN_EPS) * gamma + beta
    h = jnp.maximum(xn @ w1, 0.0)
    return (h @ w2).astype(x.dtype)


if __name__ == "__main__":
    key = jax.random.PRNGKey(0)
    kx, kp = jax.random.split(key)

    # --- Test 1: toy shapes, exact f32 matmul path (tight tolerance) ---
    B, S, d_model, d_ff, d_input = 2, 8, 32, 64, 32
    x = jax.random.normal(kx, (B, S, d_model), dtype=jnp.float32)
    gamma, beta, w1, w2 = init_params(kp, d_model, d_input, d_ff)
    ref = _reference(x, gamma, beta, w1, w2)

    out_f32 = jax.block_until_ready(
        poswise_ffn(x, gamma, beta, w1, w2, matmul_dtype=jnp.float32))
    assert out_f32.shape == (B, S, d_input), out_f32.shape
    assert jnp.allclose(out_f32, ref, atol=1e-4, rtol=1e-4), "f32 path mismatch"

    # --- Test 2: default bf16 MXU path (bf16 operands + bf16 x stream, f32 accumulation) ---
    out_bf16 = jax.block_until_ready(poswise_ffn(x, gamma, beta, w1, w2))
    assert out_bf16.shape == (B, S, d_input), out_bf16.shape
    assert jnp.allclose(out_bf16, ref, atol=3e-2, rtol=3e-2), "bf16 path mismatch"

    # --- Test 3: padding + multi-tile grid (row tiles AND d_ff chunks exercised) ---
    B2, S2, dm2, dff2, di2 = 2, 72, 96, 320, 64
    kx2, kp2 = jax.random.split(jax.random.PRNGKey(1))
    x2 = jax.random.normal(kx2, (B2, S2, dm2), dtype=jnp.float32)
    g2, b2, w12, w22 = init_params(kp2, dm2, di2, dff2)
    out2 = jax.block_until_ready(
        poswise_ffn(x2, g2, b2, w12, w22, tm=64, tk=128))
    ref2 = _reference(x2, g2, b2, w12, w22)
    assert out2.shape == (B2, S2, di2), out2.shape
    assert jnp.allclose(out2, ref2, atol=3e-2, rtol=3e-2), "tiled/padded path mismatch"

    print("KERNEL_OK")
</pallas_src>

<mosaic_0001>
module attributes {stable_mosaic.version = 11 : i64} {
  func.func @_ffn_kernel(%arg0: i32, %arg1: i32, %arg2: memref<16x128xf32, #tpu.memory_space<vmem>>, %arg3: memref<1x128xf32, #tpu.memory_space<vmem>>, %arg4: memref<1x128xf32, #tpu.memory_space<vmem>>, %arg5: memref<128x128xf32, #tpu.memory_space<vmem>>, %arg6: memref<128x128xf32, #tpu.memory_space<vmem>>, %arg7: memref<16x128xf32, #tpu.memory_space<vmem>>, %arg8: memref<16x128xf32, #tpu.memory_space<vmem>>) attributes {dimension_semantics = [#tpu.dimension_semantics<parallel>, #tpu.dimension_semantics<arbitrary>], iteration_bounds = array<i64: 1, 1>, scalar_prefetch = 0 : i64, scratch_operands = 1 : i64, tpu.core_type = #tpu.core_type<tc>, window_params = [{transform_indices = @transform_0, window_bounds = array<i64: 16, 128>}, {pipeline_mode = #tpu.pipeline_mode<synchronous>, transform_indices = @transform_1, window_bounds = array<i64: 1, 128>}, {pipeline_mode = #tpu.pipeline_mode<synchronous>, transform_indices = @transform_2, window_bounds = array<i64: 1, 128>}, {transform_indices = @transform_3, window_bounds = array<i64: 128, 128>}, {transform_indices = @transform_4, window_bounds = array<i64: 128, 128>}, {transform_indices = @transform_5, window_bounds = array<i64: 16, 128>}]} {
    %c0_i32 = arith.constant 0 : i32
    %0 = arith.cmpi eq, %arg1, %c0_i32 : i32
    %1 = arith.extui %0 : i1 to i32
    %c0_i32_0 = arith.constant 0 : i32
    %2 = arith.cmpi ne, %1, %c0_i32_0 : i32
    scf.if %2 {
      %c0_12 = arith.constant 0 : index
      %c0_13 = arith.constant 0 : index
      %13 = vector.load %arg2[%c0_12, %c0_13] : memref<16x128xf32, #tpu.memory_space<vmem>>, vector<16x128xf32>
      %14 = tpu.iota {dimensions = array<i32: 1>} : vector<16x128xi32>
      %c32_i32 = arith.constant 32 : i32
      %15 = vector.broadcast %c32_i32 : i32 to vector<16x128xi32>
      %16 = arith.cmpi slt, %14, %15 : vector<16x128xi32>
      %cst_14 = arith.constant 0.000000e+00 : f32
      %17 = vector.broadcast %cst_14 : f32 to vector<16x128xf32>
      %18 = arith.select %16, %13, %17 : vector<16x128xi1>, vector<16x128xf32>
      %cst_15 = arith.constant dense<0.000000e+00> : vector<16xf32>
      %19 = vector.multi_reduction <add>, %18, %cst_15 [1] : vector<16x128xf32> to vector<16xf32>
      %20 = vector.shape_cast %19 : vector<16xf32> to vector<16x1xf32>
      %cst_16 = arith.constant 3.125000e-02 : f32
      %21 = vector.broadcast %cst_16 : f32 to vector<16x1xf32>
      %22 = arith.mulf %20, %21 : vector<16x1xf32>
      %23 = vector.broadcast %22 : vector<16x1xf32> to vector<16x128xf32>
      %24 = arith.subf %18, %23 : vector<16x128xf32>
      %cst_17 = arith.constant 0.000000e+00 : f32
      %25 = vector.broadcast %cst_17 : f32 to vector<16x128xf32>
      %26 = arith.select %16, %24, %25 : vector<16x128xi1>, vector<16x128xf32>
      %27 = arith.mulf %26, %26 : vector<16x128xf32>
      %cst_18 = arith.constant dense<0.000000e+00> : vector<16xf32>
      %28 = vector.multi_reduction <add>, %27, %cst_18 [1] : vector<16x128xf32> to vector<16xf32>
      %29 = vector.shape_cast %28 : vector<16xf32> to vector<16x1xf32>
      %cst_19 = arith.constant 3.125000e-02 : f32
      %30 = vector.broadcast %cst_19 : f32 to vector<16x1xf32>
      %31 = arith.mulf %29, %30 : vector<16x1xf32>
      %cst_20 = arith.constant 9.99999974E-6 : f32
      %32 = vector.broadcast %cst_20 : f32 to vector<16x1xf32>
      %33 = arith.addf %31, %32 : vector<16x1xf32>
      %34 = math.rsqrt %33 : vector<16x1xf32>
      %35 = vector.broadcast %34 : vector<16x1xf32> to vector<16x128xf32>
      %36 = arith.mulf %26, %35 : vector<16x128xf32>
      %c0_21 = arith.constant 0 : index
      %c0_22 = arith.constant 0 : index
      %37 = vector.load %arg3[%c0_21, %c0_22] : memref<1x128xf32, #tpu.memory_space<vmem>>, vector<1x128xf32>
      %38 = vector.broadcast %37 : vector<1x128xf32> to vector<16x128xf32>
      %39 = arith.mulf %36, %38 : vector<16x128xf32>
      %c0_23 = arith.constant 0 : index
      %c0_24 = arith.constant 0 : index
      %40 = vector.load %arg4[%c0_23, %c0_24] : memref<1x128xf32, #tpu.memory_space<vmem>>, vector<1x128xf32>
      %41 = vector.broadcast %40 : vector<1x128xf32> to vector<16x128xf32>
      %42 = arith.addf %39, %41 : vector<16x128xf32>
      %c0_25 = arith.constant 0 : index
      %c0_26 = arith.constant 0 : index
      %43 = vector.load %arg8[%c0_25, %c0_26] : memref<16x128xf32, #tpu.memory_space<vmem>>, vector<16x128xf32>
      tpu.vector_store %arg8[%c0_25, %c0_26], %42 {strides = array<i32>} : memref<16x128xf32, #tpu.memory_space<vmem>>, vector<16x128xf32>,
      %cst_27 = arith.constant 0.000000e+00 : f32
      %44 = vector.broadcast %cst_27 : f32 to vector<16x128xf32>
      %c0_28 = arith.constant 0 : index
      %c0_29 = arith.constant 0 : index
      %45 = vector.load %arg7[%c0_28, %c0_29] : memref<16x128xf32, #tpu.memory_space<vmem>>, vector<16x128xf32>
      tpu.vector_store %arg7[%c0_28, %c0_29], %44 {strides = array<i32>} : memref<16x128xf32, #tpu.memory_space<vmem>>, vector<16x128xf32>,
    } else {
    }
    %c0 = arith.constant 0 : index
    %c0_1 = arith.constant 0 : index
    %3 = vector.load %arg8[%c0, %c0_1] : memref<16x128xf32, #tpu.memory_space<vmem>>, vector<16x128xf32>
    %c0_2 = arith.constant 0 : index
    %c0_3 = arith.constant 0 : index
    %4 = vector.load %arg5[%c0_2, %c0_3] : memref<128x128xf32, #tpu.memory_space<vmem>>, vector<128x128xf32>
    %cst = arith.constant dense<0.000000e+00> : vector<16x128xf32>
    %5 = tpu.matmul %3, %4, %cst {dimension_numbers = #tpu.dot_dimension_numbers<[1], [0], [0], [1], [0, 0, 1, 1], [], []>} : vector<16x128xf32>, vector<128x128xf32>, vector<16x128xf32> -> vector<16x128xf32>
    %cst_4 = arith.constant 0.000000e+00 : f32
    %6 = vector.broadcast %cst_4 : f32 to vector<16x128xf32>
    %7 = arith.maximumf %5, %6 : vector<16x128xf32>
    %c0_5 = arith.constant 0 : index
    %c0_6 = arith.constant 0 : index
    %8 = vector.load %arg7[%c0_5, %c0_6] : memref<16x128xf32, #tpu.memory_space<vmem>>, vector<16x128xf32>
    %c0_7 = arith.constant 0 : index
    %c0_8 = arith.constant 0 : index
    %9 = vector.load %arg6[%c0_7, %c0_8] : memref<128x128xf32, #tpu.memory_space<vmem>>, vector<128x128xf32>
    %cst_9 = arith.constant dense<0.000000e+00> : vector<16x128xf32>
    %10 = tpu.matmul %7, %9, %cst_9 {dimension_numbers = #tpu.dot_dimension_numbers<[1], [0], [0], [1], [0, 0, 1, 1], [], []>} : vector<16x128xf32>, vector<128x128xf32>, vector<16x128xf32> -> vector<16x128xf32>
    %11 = arith.addf %8, %10 : vector<16x128xf32>
    %c0_10 = arith.constant 0 : index
    %c0_11 = arith.constant 0 : index
    %12 = vector.load %arg7[%c0_10, %c0_11] : memref<16x128xf32, #tpu.memory_space<vmem>>, vector<16x128xf32>
    tpu.vector_store %arg7[%c0_10, %c0_11], %11 {strides = array<i32>} : memref<16x128xf32, #tpu.memory_space<vmem>>, vector<16x128xf32>,
    return
  }
  func.func @transform_0(%arg0: i32, %arg1: i32) -> (i32, i32) {
    %c0_i32 = arith.constant 0 : i32
    %c0_i32_0 = arith.constant 0 : i32
    return %arg0, %c0_i32 : i32, i32
  }
  func.func @transform_1(%arg0: i32, %arg1: i32) -> (i32, i32) {
    %c0_i32 = arith.constant 0 : i32
    %c0_i32_0 = arith.constant 0 : i32
    %c0_i32_1 = arith.constant 0 : i32
    return %c0_i32, %c0_i32_0 : i32, i32
  }
  func.func @transform_2(%arg0: i32, %arg1: i32) -> (i32, i32) {
    %c0_i32 = arith.constant 0 : i32
    %c0_i32_0 = arith.constant 0 : i32
    %c0_i32_1 = arith.constant 0 : i32
    return %c0_i32, %c0_i32_0 : i32, i32
  }
  func.func @transform_3(%arg0: i32, %arg1: i32) -> (i32, i32) {
    %c0_i32 = arith.constant 0 : i32
    %c0_i32_0 = arith.constant 0 : i32
    return %c0_i32, %arg1 : i32, i32
  }
  func.func @transform_4(%arg0: i32, %arg1: i32) -> (i32, i32) {
    %c0_i32 = arith.constant 0 : i32
    %c0_i32_0 = arith.constant 0 : i32
    return %arg1, %c0_i32 : i32, i32
  }
  func.func @transform_5(%arg0: i32, %arg1: i32) -> (i32, i32) {
    %c0_i32 = arith.constant 0 : i32
    %c0_i32_0 = arith.constant 0 : i32
    return %arg0, %c0_i32 : i32, i32
  }
}

</mosaic_0001>

<bundles_post_ra>
// kernel: tpu_custom_call.1
= control target key start
LH: loop header
LB: loop body
LE: loop exit
PB: predicated region body
PF: predicated region fallthrough
CT: control target
= control target key end

     0   :  { %10 = vsyncpa [#allocation4], 0  ;;  %s515_s0 = inlined_call_operand.hbm [shape: f32[16,128], index: 0, kind: input, shape index: {}]   ;;  %s516_s1 = inlined_call_operand.hbm [shape: f32[1,128], index: 1, kind: input, shape index: {}]   ;;  %s517_s2 = inlined_call_operand.vmem [shape: f32[1,128], index: 2, kind: input, shape index: {}]   ;;  %s518_s3 = inlined_call_operand.hbm [shape: f32[128,128], index: 3, kind: input, shape index: {}]   ;;  %s519_s4 = inlined_call_operand.hbm [shape: f32[128,128], index: 4, kind: input, shape index: {}]   ;;  %s520_s5 = inlined_call_operand.hbm [shape: f32[16,128], index: 5, kind: output, shape index: {}]  }
   0x1   :  { %11 = vsyncpa [#allocation7], 0 }
   0x2   :  { %12 = vsyncpa [#allocation10], 0  ;;  %s32_s20 = sshll.u32 %s516_s1, 4  ;;  %s33_s20 = int_to_ptr.hbm [resolvable:$true] %s32_s20 }
   0x3   :  { %13 = vsyncpa [#allocation5], 0  ;;  %s434_s21 = smov [#allocation6]   ;;  %s18_s25 = sshll.u32 %s515_s0, 4  ;;  %s19_s25 = int_to_ptr.hbm [resolvable:$true] %s18_s25 }
   0x4   :  { %s34_s22 = sshll.u32 %s434_s21, 4  ;;  %s435_s26 = smov [#allocation3]   ;;  %s35_s22 = int_to_ptr.vmem [resolvable:$true] %s34_s22 }
   0x5   :  { %37 = dma.hbm_to_vmem [thread:$0]  %s33_s20, 16, %s35_s22, [#allocation7]  }
   0x6   :  { %s20_s27 = sshll.u32 %s435_s26, 4  ;;  %s436_s28 = smov 128   ;;  %s21_s27 = int_to_ptr.vmem [resolvable:$true] %s20_s27 }
   0x7   :  { %s437_s29 = smov 8   ;;  %s44_s6 = sshll.u32 %s518_s3, 4  ;;  %s45_s6 = int_to_ptr.hbm [resolvable:$true] %s44_s6 }
   0x8   :  { %26 = dma.hbm_to_vmem [thread:$0]  %s19_s25, 256, %s21_s27, [#allocation4], %s436_s28, %s436_s28, %s437_s29  }
   0x9   :  { %s438_s7 = smov [#allocation8]   ;;  %s57_s10 = sshll.u32 %s519_s4, 4  ;;  %s58_s10 = int_to_ptr.hbm [resolvable:$true] %s57_s10 }
   0xa   :  { %s46_s8 = sshll.u32 %s438_s7, 4  ;;  %s439_s11 = smov [#allocation9]   ;;  %s47_s8 = int_to_ptr.vmem [resolvable:$true] %s46_s8 }
   0xb   :  { %52 = dma.hbm_to_vmem [thread:$0]  %s45_s6, 2048, %s47_s8, [#allocation7], %s436_s28, %s436_s28, %s437_s29  }
   0xc   :  { %s59_s12 = sshll.u32 %s439_s11, 4  ;;  %s60_s12 = int_to_ptr.vmem [resolvable:$true] %s59_s12 }
   0xd   :  { %65 = dma.hbm_to_vmem [thread:$0]  %s58_s10, 2048, %s60_s12, [#allocation10], %s436_s28, %s436_s28, %s437_s29  }
   0xe   :  { %426 = dma.done.wait [#allocation4], 256  }
   0xf   :  { %427 = vsyncadd [#allocation4], 4294967040 }
  0x10   :  { %428 = dma.done.wait [#allocation7], 2064  }
  0x11   :  { %429 = vsyncadd [#allocation7], 4294965232 }
  0x12   :  { %430 = dma.done.wait [#allocation10], 2048  }
  0x13   :  { %431 = vsyncadd [#allocation10], 4294965248  ;;  %v88_v0 = vlaneseq  ;;  %v87_v2 = vld [vmem:[#allocation3 + $0x8] sm:$0xff]  ;;  %v86_v4 = vld [vmem:[#allocation3] sm:$0xff]  ;;  %s245_s16 = sshll.u32 %s520_s5, 4  ;;  %s246_s16 = int_to_ptr.hbm [resolvable:$true] %s245_s16 }
  0x14   :  { %v168_v6 = vld [vmem:[#allocation8 + $0x78] sm:$0xff]  ;;  %v167_v7 = vld [vmem:[#allocation8 + $0x70] sm:$0xff]  ;;  %v166_v18 = vld [vmem:[#allocation8 + $0x68] sm:$0xff] }
  0x15   :  { %v89_v1 = vand.u32 127, %v88_v0  ;;  %260 = vmatpush.msra.mxu2 %v168_v6  ;;  %169 = vmatpush.msra.mxu0 %v168_v6  ;;  %v165_v19 = vld [vmem:[#allocation8 + $0x60] sm:$0xff]  ;;  %v164_v20 = vld [vmem:[#allocation8 + $0x58] sm:$0xff]  ;;  %v163_v21 = vld [vmem:[#allocation8 + $0x50] sm:$0xff] }
  0x16   :  { %v162_v22 = vld [vmem:[#allocation8 + $0x48] sm:$0xff]  ;;  %v161_v23 = vld [vmem:[#allocation8 + $0x40] sm:$0xff]  ;;  %v160_v24 = vld [vmem:[#allocation8 + $0x38] sm:$0xff] }
  0x17   :  { %vm90_vm0 = vcmp.lt.s32.totalorder %v89_v1, 32  ;;  %261 = vmatpush.msra.mxu2 %v167_v7  ;;  %170 = vmatpush.msra.mxu0 %v167_v7  ;;  %v159_v25 = vld [vmem:[#allocation8 + $0x30] sm:$0xff]  ;;  %v158_v26 = vld [vmem:[#allocation8 + $0x28] sm:$0xff]  ;;  %v157_v27 = vld [vmem:[#allocation8 + $0x20] sm:$0xff] }
  0x18   :  { %v92_v3 = vsel %vm90_vm0, %v87_v2, 0.0  ;;  %v91_v5 = vsel %vm90_vm0, %v86_v4, 0.0  ;;  %v156_v28 = vld [vmem:[#allocation8 + $0x18] sm:$0xff]  ;;  %v155_v29 = vld [vmem:[#allocation8 + $0x10] sm:$0xff]  ;;  %v154_v30 = vld [vmem:[#allocation8 + $0x8] sm:$0xff] }
  0x19   :  { %95 = vadd.xlane.f32.xlu0 %v92_v3  ;;  %262 = vmatpush.msra.mxu2 %v166_v18  ;;  %v153_v31 = vld [vmem:[#allocation8] sm:$0xff]  ;;  %v211_v35 = vld [vmem:[#allocation9 + $0x78] sm:$0xff]  ;;  %v210_v36 = vld [vmem:[#allocation9 + $0x70] sm:$0xff] }
  0x1a   :  { %171 = vmatpush.msra.mxu0 %v166_v18  ;;  %276 = vmatpush.msra.mxu3 %v211_v35  ;;  %v209_v37 = vld [vmem:[#allocation9 + $0x68] sm:$0xff]  ;;  %v208_v40 = vld [vmem:[#allocation9 + $0x60] sm:$0xff]  ;;  %v207_v43 = vld [vmem:[#allocation9 + $0x58] sm:$0xff] }
  0x1b   :  { %263 = vmatpush.msra.mxu2 %v165_v19  ;;  %212 = vmatpush.msra.mxu1 %v211_v35  ;;  %v206_v45 = vld [vmem:[#allocation9 + $0x50] sm:$0xff]  ;;  %v205_v47 = vld [vmem:[#allocation9 + $0x48] sm:$0xff]  ;;  %v204_v49 = vld [vmem:[#allocation9 + $0x40] sm:$0xff] }
  0x1c   :  { %172 = vmatpush.msra.mxu0 %v165_v19  ;;  %277 = vmatpush.msra.mxu3 %v210_v36  ;;  %v203_v52 = vld [vmem:[#allocation9 + $0x38] sm:$0xff]  ;;  %v202_v56 = vld [vmem:[#allocation9 + $0x30] sm:$0xff]  ;;  %v301_v60 = vld [vmem:[%s517_s2] ss:$0 sm:$0xff]  ;;  %s440_s2 = smov [#allocation11]  }
  0x1d   :  { %264 = vmatpush.msra.mxu2 %v164_v20  ;;  %213 = vmatpush.msra.mxu1 %v210_v36  ;;  %v300_v55 = vld [vmem:[#allocation6] ss:$0 sm:$0xff]  ;;  %v201_v61 = vld [vmem:[#allocation9 + $0x28] sm:$0xff]  ;;  %v200_v0 = vld [vmem:[#allocation9 + $0x20] sm:$0xff]  ;;  %s243_s13 = sshll.u32 %s440_s2, 4  ;;  %s244_s13 = int_to_ptr.vmem [resolvable:$true] %s243_s13 }
  0x1e   :  { %173 = vmatpush.msra.mxu0 %v164_v20  ;;  %278 = vmatpush.msra.mxu3 %v209_v37 }
  0x1f   :  { %265 = vmatpush.msra.mxu2 %v163_v21  ;;  %214 = vmatpush.msra.mxu1 %v209_v37 }
  0x20   :  { %174 = vmatpush.msra.mxu0 %v163_v21  ;;  %279 = vmatpush.msra.mxu3 %v208_v40 }
  0x21   :  { %93 = vadd.xlane.f32.xlu0 %v91_v5  ;;  %266 = vmatpush.msra.mxu2 %v162_v22 }
  0x22   :  { %175 = vmatpush.msra.mxu0 %v162_v22  ;;  %215 = vmatpush.msra.mxu1 %v208_v40 }
  0x23   :  { %267 = vmatpush.msra.mxu2 %v161_v23  ;;  %280 = vmatpush.msra.mxu3 %v207_v43 }
  0x24   :  { %176 = vmatpush.msra.mxu0 %v161_v23  ;;  %216 = vmatpush.msra.mxu1 %v207_v43 }
  0x25   :  { %268 = vmatpush.msra.mxu2 %v160_v24  ;;  %281 = vmatpush.msra.mxu3 %v206_v45 }
  0x26   :  { %177 = vmatpush.msra.mxu0 %v160_v24  ;;  %217 = vmatpush.msra.mxu1 %v206_v45 }
  0x27   :  { %269 = vmatpush.msra.mxu2 %v159_v25  ;;  %282 = vmatpush.msra.mxu3 %v205_v47 }
  0x28   :  { %178 = vmatpush.msra.mxu0 %v159_v25  ;;  %218 = vmatpush.msra.mxu1 %v205_v47 }
  0x29   :  { %270 = vmatpush.msra.mxu2 %v158_v26  ;;  %283 = vmatpush.msra.mxu3 %v204_v49 }
  0x2a   :  { %179 = vmatpush.msra.mxu0 %v158_v26  ;;  %219 = vmatpush.msra.mxu1 %v204_v49 }
  0x2b   :  { %271 = vmatpush.msra.mxu2 %v157_v27  ;;  %284 = vmatpush.msra.mxu3 %v203_v52 }
  0x2c   :  { %180 = vmatpush.msra.mxu0 %v157_v27  ;;  %220 = vmatpush.msra.mxu1 %v203_v52 }
  0x2d   :  { %272 = vmatpush.msra.mxu2 %v156_v28  ;;  %285 = vmatpush.msra.mxu3 %v202_v56 }
  0x2e   :  { %181 = vmatpush.msra.mxu0 %v156_v28  ;;  %221 = vmatpush.msra.mxu1 %v202_v56 }
  0x2f   :  { %273 = vmatpush.msra.mxu2 %v155_v29  ;;  %286 = vmatpush.msra.mxu3 %v201_v61 }
  0x30   :  { %182 = vmatpush.msra.mxu0 %v155_v29  ;;  %222 = vmatpush.msra.mxu1 %v201_v61 }
  0x31   :  { %274 = vmatpush.msra.mxu2 %v154_v30  ;;  %287 = vmatpush.msra.mxu3 %v200_v0 }
  0x32   :  { %183 = vmatpush.msra.mxu0 %v154_v30  ;;  %223 = vmatpush.msra.mxu1 %v200_v0 }
  0x33   :  { %275 = vmatpush.msra.mxu2 %v153_v31 }
  0x34   :  { %184 = vmatpush.msra.mxu0 %v153_v31 }
  0x8c   :  { %v96_v8 = vpop.xlane.xlu0 %95 }
  0x8d   :  { %v98_v9 = vmul.f32 0.03125, %v96_v8 }
  0x8f   :  { %v100_v10 = vsub.f32 %v92_v3, %v98_v9  ;;  %v199_v3 = vld [vmem:[#allocation9 + $0x18] sm:$0xff] }
  0x90   :  { %288 = vmatpush.msra.mxu3 %v199_v3  ;;  %224 = vmatpush.msra.mxu1 %v199_v3 }
  0x91   :  { %v495_v11 = vsel %vm90_vm0, %v100_v10, 0.0  ;;  %v197_v10 = vld [vmem:[#allocation9 + $0x8] sm:$0xff] }
  0x92   :  { %v104_v12 = vmul.f32 %v495_v11, %v495_v11 }
  0x94   :  { %107 = vadd.xlane.f32.xlu1 %v104_v12  ;;  %v94_v13 = vpop.xlane.xlu0 %93 }
  0x95   :  { %v97_v14 = vmul.f32 0.03125, %v94_v13 }
  0x97   :  { %v99_v15 = vsub.f32 %v91_v5, %v97_v14  ;;  %v198_v5 = vld [vmem:[#allocation9 + $0x10] sm:$0xff] }
  0x98   :  { %289 = vmatpush.msra.mxu3 %v198_v5  ;;  %225 = vmatpush.msra.mxu1 %v198_v5 }
  0x99   :  { %v500_v16 = vsel %vm90_vm0, %v99_v15, 0.0 }
  0x9a   :  { %v103_v17 = vmul.f32 %v500_v16, %v500_v16  ;;  %290 = vmatpush.msra.mxu3 %v197_v10  ;;  %226 = vmatpush.msra.mxu1 %v197_v10 }
  0x9c   :  { %105 = vadd.xlane.f32.xlu1 %v103_v17 }
 0x107   :  { %v108_v32 = vpop.xlane.xlu1 %107 }
 0x108   :  { %v110_v33 = vmul.f32 0.03125, %v108_v32 }
 0x10a   :  { %v112_v34 = vadd.f32 1e-05, %v110_v33 }
 0x10c   :  { %302 = vrsqrt.f32 %v112_v34  ;;  %vm129_vm2 = vweird.f32 %v112_v34 }
 0x10f   :  { %v106_v38 = vpop.xlane.xlu1 %105 }
 0x110   :  { %v109_v39 = vmul.f32 0.03125, %v106_v38 }
 0x112   :  { %v303_v41 = vpop.eup %302  ;;  %v111_v42 = vadd.f32 1e-05, %v109_v39 }
 0x113   :  { %v124_v44 = vmul.f32 %v303_v41, %v112_v34  ;;  %vm130_vm1 = vweird.f32 %v303_v41 }
 0x114   :  { %304 = vrsqrt.f32 %v111_v42  ;;  %vm131_vm3 = vmor %vm129_vm2, %vm130_vm1  ;;  %vm119_vm5 = vweird.f32 %v111_v42 }
 0x115   :  { %v125_v46 = vmul.f32 %v303_v41, %v124_v44 }
 0x117   :  { %v126_v48 = vmul.f32 0.5, %v125_v46 }
 0x119   :  { %v127_v50 = vsub.f32 1.5, %v126_v48 }
 0x11a   :  { %v305_v51 = vpop.eup %304 }
 0x11b   :  { %v128_v53 = vmul.f32 %v303_v41, %v127_v50  ;;  %v114_v54 = vmul.f32 %v305_v51, %v111_v42  ;;  %vm120_vm4 = vweird.f32 %v305_v51 }
 0x11c   :  { %vm121_vm6 = vmor %vm119_vm5, %vm120_vm4 }
 0x11d   :  { %v115_v57 = vmul.f32 %v305_v51, %v114_v54  ;;  %v132_v58 = vsel %vm131_vm3, %v303_v41, %v128_v53 }
 0x11e   :  { %v134_v59 = vmul.f32 %v132_v58, %v495_v11  ;;  %v196_v11 = vld [vmem:[#allocation9] sm:$0xff] }
 0x11f   :  { %v116_v62 = vmul.f32 0.5, %v115_v57  ;;  %291 = vmatpush.msra.mxu3 %v196_v11  ;;  %227 = vmatpush.msra.mxu1 %v196_v11 }
 0x120   :  { %v140_v63 = vmul.f32 %v300_v55, %v134_v59 }
 0x121   :  { %v117_v1 = vsub.f32 1.5, %v116_v62 }
 0x122   :  { %v146_v2 = vadd.f32 %v301_v60, %v140_v63 }
 0x123   :  { %v118_v4 = vmul.f32 %v305_v51, %v117_v1 }
 0x124   :  { %188 = vmatmul.f32.vlgmr.msra.gmra.mxu2 %v146_v2 }
 0x125   :  { %v122_v6 = vsel %vm121_vm6, %v305_v51, %v118_v4 }
 0x126   :  { %v133_v7 = vmul.f32 %v122_v6, %v500_v16 }
 0x128   :  { %v139_v8 = vmul.f32 %v300_v55, %v133_v7 }
 0x12a   :  { %v145_v9 = vadd.f32 %v301_v60, %v139_v8 }
 0x12c   :  { %185 = vmatmul.f32.vlgmr.msra.gmra.mxu0 %v145_v9 }
 0x1a7   :  { %v189_v12 = vpop.f32.mrf.mxu2 }
 0x1a8   :  { %v193_v13 = vmax.f32 %v189_v12, 0.0 }
 0x1a9   :  { %v186_v14 = vpop.f32.mrf.mxu0 }
 0x1aa   :  { %v192_v15 = vmax.f32 %v186_v14, 0.0  ;;  %231 = vmatmul.f32.vlgmr.msra.gmra.mxu3 %v193_v13 }
 0x1ac   :  { %228 = vmatmul.f32.vlgmr.msra.gmra.mxu1 %v192_v15 }
 0x229   :  { %v229_v17 = vpop.f32.mrf.mxu1 }
 0x22a   :  { %237 = vst [vmem:[#allocation11] sm:$0xff] %v229_v17 }
 0x22d   :  { %v232_v16 = vpop.f32.mrf.mxu3 }
 0x22e   :  { %238 = vst [vmem:[#allocation11 + $0x8] sm:$0xff] %v232_v16 }
 0x22f   :  { %251 = dma.vmem_to_hbm [thread:$0]  %s244_s13, 256, %s246_s16, [#allocation5], %s436_s28, %s436_s28, %s437_s29  }
 0x230   :  { %432 = dma.done.wait [#allocation5], 256  }
 0x231   :  { %433 = vsyncadd [#allocation5], 4294967040 }
 0x232   :  { %256 = vsyncpa [#allocation4], 1 }
 0x233   :  { %257 = vsyncpa [#allocation7], 1 }
 0x234   :  { %258 = vsyncpa [#allocation10], 1 }
 0x235   :  { %259 = vsyncpa [#allocation5], 1 }

</bundles_post_ra>
